<compile_context>
chip_gen: v6e
topology: v6e:2x2x1
jax: 0.10.0
libtpu: 0.0.40
codegen_flags: <defaults>
</compile_context>

<pallas_src>
import jax
import jax.numpy as jnp
from jax import lax
from jax.experimental import pallas as pl
from jax.experimental.pallas import tpu as pltpu

EPS = 1e-4
NEG_SLOPE = 0.01


def _linear_bn_lrelu_kernel(x_ref, w_ref, o_ref):
    # x_ref: (B, In) full batch / full K, resident across the Out grid.
    # w_ref: (TN, In) one tile of the weight in PyTorch (Out, In) layout.
    # o_ref: (B, TN)  matching output tile.
    x = x_ref[...]                      # native dtype straight into the MXU
    w = w_ref[...]

    # y = x @ w.T, contracting the last dim of both operands (folds the
    # PyTorch-layout transpose into the matmul; f32 accumulation).
    y = lax.dot_general(
        x, w,
        dimension_numbers=(((1,), (1,)), ((), ())),
        preferred_element_type=jnp.float32,
    )                                   # (B, TN) f32

    # BatchNorm1d, training mode: per-feature batch mean / biased variance,
    # computed in a single pass over the tile.
    inv_b = 1.0 / y.shape[0]
    sum_y = jnp.sum(y, axis=0, keepdims=True)          # (1, TN)
    sum_y2 = jnp.sum(y * y, axis=0, keepdims=True)     # (1, TN)
    mean = sum_y * inv_b
    var = jnp.maximum(sum_y2 * inv_b - mean * mean, 0.0)  # guard cancellation
    norm = (y - mean) * lax.rsqrt(var + EPS)

    # Leaky ReLU (slope 0.01).
    out = jnp.where(norm >= 0.0, norm, NEG_SLOPE * norm)
    o_ref[...] = out.astype(o_ref.dtype)


def linear_bn_leaky_relu(x, weight, *, tn=None):
    """x: (B, in_features); weight: (out_features, in_features) (PyTorch layout)."""
    B, In = x.shape
    Out, In_w = weight.shape
    assert In == In_w, f"in_features mismatch: {In} vs {In_w}"

    # Output-feature tile: prefer 256 (fills v6e/v7x 2x256^2 MXU), then 128,
    # else the whole Out (tiny / ragged case).
    if tn is None:
        if Out % 256 == 0:
            tn = 256
        elif Out % 128 == 0:
            tn = 128
        else:
            tn = Out
    assert Out % tn == 0
    grid = (Out // tn,)

    itemsize = jnp.dtype(x.dtype).itemsize
    # Advisory cost estimate so XLA can schedule neighbours around the call.
    cost = pl.CostEstimate(
        flops=2 * B * In * Out,
        transcendentals=0,
        bytes_accessed=(B * In + Out * In + B * Out) * itemsize,
    )

    # VMEM budget: double-buffered inputs + double-buffered output tile
    # + f32 intermediates; keep under ~48 MiB so it also fits v7x (64 MiB).
    vmem_need = (
        2 * (B * In + tn * In) * itemsize   # pipelined input buffers
        + 2 * B * tn * itemsize             # pipelined output buffers
        + 4 * B * tn * 4                    # f32 intermediates headroom
    )
    vmem_limit = int(min(max(2 * vmem_need, 32 * 1024 * 1024), 48 * 1024 * 1024))

    return pl.pallas_call(
        _linear_bn_lrelu_kernel,
        out_shape=jax.ShapeDtypeStruct((B, Out), x.dtype),
        grid_spec=pltpu.PrefetchScalarGridSpec(
            num_scalar_prefetch=0,
            grid=grid,
            in_specs=[
                # Full (B, In) activation, same block every step -> resident.
                pl.BlockSpec((B, In), lambda j: (0, 0)),
                # Stream (TN, In) weight tiles in native PyTorch layout.
                pl.BlockSpec((tn, In), lambda j: (j, 0)),
            ],
            out_specs=pl.BlockSpec((B, tn), lambda j: (0, j)),
        ),
        compiler_params=pltpu.CompilerParams(
            dimension_semantics=("parallel",),   # shard Out tiles across TCs (v7x)
            vmem_limit_bytes=vmem_limit,
        ),
        cost_estimate=cost,
    )(x, weight)


if __name__ == "__main__":
    # Small deterministic example consistent with the module's forward:
    # batch=8, in_features=64, out_features=512 (2 grid steps at TN=256).
    B, IN_F, OUT_F = 8, 64, 512
    key = jax.random.PRNGKey(0)
    kx, kw = jax.random.split(key)

    x = jax.random.normal(kx, (B, IN_F), dtype=jnp.float32)
    # Deterministic synthetic Linear weight (PyTorch shape: (out, in)).
    weight = 0.1 * jax.random.normal(kw, (OUT_F, IN_F), dtype=jnp.float32)

    out = linear_bn_leaky_relu(x, weight)
    jax.block_until_ready(out)

    # Pure-JAX reference (two-pass BN) for a sanity check.
    y_ref = x @ weight.T
    mean = y_ref.mean(axis=0, keepdims=True)
    var = ((y_ref - mean) ** 2).mean(axis=0, keepdims=True)
    norm = (y_ref - mean) / jnp.sqrt(var + EPS)
    ref = jnp.where(norm >= 0, norm, NEG_SLOPE * norm)
    assert out.shape == ref.shape
    assert jnp.allclose(out, ref, atol=1e-3, rtol=1e-3), (
        float(jnp.max(jnp.abs(out - ref)))
    )

    print("KERNEL_OK")
</pallas_src>

<mosaic_0001>
module attributes {stable_mosaic.version = 11 : i64} {
  func.func @_linear_bn_lrelu_kernel(%arg0: i32, %arg1: memref<8x64xf32, #tpu.memory_space<vmem>>, %arg2: memref<256x64xf32, #tpu.memory_space<vmem>>, %arg3: memref<8x256xf32, #tpu.memory_space<vmem>>) attributes {dimension_semantics = [#tpu.dimension_semantics<parallel>], iteration_bounds = array<i64: 2>, scalar_prefetch = 0 : i64, scratch_operands = 0 : i64, tpu.core_type = #tpu.core_type<tc>, window_params = [{pipeline_mode = #tpu.pipeline_mode<synchronous>, transform_indices = @transform_0, window_bounds = array<i64: 8, 64>}, {transform_indices = @transform_1, window_bounds = array<i64: 256, 64>}, {transform_indices = @transform_2, window_bounds = array<i64: 8, 256>}]} {
    %c0 = arith.constant 0 : index
    %c0_0 = arith.constant 0 : index
    %0 = vector.load %arg1[%c0, %c0_0] : memref<8x64xf32, #tpu.memory_space<vmem>>, vector<8x64xf32>
    %c0_1 = arith.constant 0 : index
    %c0_2 = arith.constant 0 : index
    %1 = vector.load %arg2[%c0_1, %c0_2] : memref<256x64xf32, #tpu.memory_space<vmem>>, vector<256x64xf32>
    %cst = arith.constant dense<0.000000e+00> : vector<8x256xf32>
    %2 = tpu.matmul %0, %1, %cst {dimension_numbers = #tpu.dot_dimension_numbers<[1], [1], [0], [0], [0, 0, 1, 0], [], []>} : vector<8x64xf32>, vector<256x64xf32>, vector<8x256xf32> -> vector<8x256xf32>
    %cst_3 = arith.constant dense<0.000000e+00> : vector<256xf32>
    %3 = vector.multi_reduction <add>, %2, %cst_3 [0] : vector<8x256xf32> to vector<256xf32>
    %4 = vector.shape_cast %3 : vector<256xf32> to vector<1x256xf32>
    %5 = arith.mulf %2, %2 : vector<8x256xf32>
    %cst_4 = arith.constant dense<0.000000e+00> : vector<256xf32>
    %6 = vector.multi_reduction <add>, %5, %cst_4 [0] : vector<8x256xf32> to vector<256xf32>
    %7 = vector.shape_cast %6 : vector<256xf32> to vector<1x256xf32>
    %cst_5 = arith.constant 1.250000e-01 : f32
    %8 = vector.broadcast %cst_5 : f32 to vector<1x256xf32>
    %9 = arith.mulf %4, %8 : vector<1x256xf32>
    %cst_6 = arith.constant 1.250000e-01 : f32
    %10 = vector.broadcast %cst_6 : f32 to vector<1x256xf32>
    %11 = arith.mulf %7, %10 : vector<1x256xf32>
    %12 = arith.mulf %9, %9 : vector<1x256xf32>
    %13 = arith.subf %11, %12 : vector<1x256xf32>
    %cst_7 = arith.constant 0.000000e+00 : f32
    %14 = vector.broadcast %cst_7 : f32 to vector<1x256xf32>
    %15 = arith.maximumf %13, %14 : vector<1x256xf32>
    %16 = vector.broadcast %9 : vector<1x256xf32> to vector<8x256xf32>
    %17 = arith.subf %2, %16 : vector<8x256xf32>
    %cst_8 = arith.constant 9.99999974E-5 : f32
    %18 = vector.broadcast %cst_8 : f32 to vector<1x256xf32>
    %19 = arith.addf %15, %18 : vector<1x256xf32>
    %20 = math.rsqrt %19 : vector<1x256xf32>
    %21 = vector.broadcast %20 : vector<1x256xf32> to vector<8x256xf32>
    %22 = arith.mulf %17, %21 : vector<8x256xf32>
    %cst_9 = arith.constant 0.000000e+00 : f32
    %23 = vector.broadcast %cst_9 : f32 to vector<8x256xf32>
    %24 = arith.cmpf oge, %22, %23 : vector<8x256xf32>
    %cst_10 = arith.constant 0.00999999977 : f32
    %25 = vector.broadcast %cst_10 : f32 to vector<8x256xf32>
    %26 = arith.mulf %25, %22 : vector<8x256xf32>
    %27 = arith.select %24, %22, %26 : vector<8x256xi1>, vector<8x256xf32>
    %c0_11 = arith.constant 0 : index
    %c0_12 = arith.constant 0 : index
    %28 = vector.load %arg3[%c0_11, %c0_12] : memref<8x256xf32, #tpu.memory_space<vmem>>, vector<8x256xf32>
    tpu.vector_store %arg3[%c0_11, %c0_12], %27 {strides = array<i32>} : memref<8x256xf32, #tpu.memory_space<vmem>>, vector<8x256xf32>,
    return
  }
  func.func @transform_0(%arg0: i32) -> (i32, i32) {
    %c0_i32 = arith.constant 0 : i32
    %c0_i32_0 = arith.constant 0 : i32
    %c0_i32_1 = arith.constant 0 : i32
    return %c0_i32, %c0_i32_0 : i32, i32
  }
  func.func @transform_1(%arg0: i32) -> (i32, i32) {
    %c0_i32 = arith.constant 0 : i32
    %c0_i32_0 = arith.constant 0 : i32
    return %arg0, %c0_i32 : i32, i32
  }
  func.func @transform_2(%arg0: i32) -> (i32, i32) {
    %c0_i32 = arith.constant 0 : i32
    %c0_i32_0 = arith.constant 0 : i32
    return %c0_i32, %arg0 : i32, i32
  }
}

</mosaic_0001>

<bundles_post_ra>
// kernel: tpu_custom_call.1
= control target key start
LH: loop header
LB: loop body
LE: loop exit
PB: predicated region body
PF: predicated region fallthrough
CT: control target
= control target key end

     0   :  { %7 = vsyncpa [#allocation3], 0  ;;  %s843_s0 = inlined_call_operand.vmem [shape: f32[8,64], index: 0, kind: input, shape index: {}]   ;;  %s844_s1 = inlined_call_operand.vmem [shape: f32[512,64], index: 1, kind: input, shape index: {}]   ;;  %s845_s2 = inlined_call_operand.hbm [shape: f32[8,512], index: 2, kind: output, shape index: {}]  }
   0x1   :  { %9 = vsyncpa [#allocation3 + $0x1], 0  ;;  %s676_s9 = smov 0   ;;  %s678_s10 = smov 0  }
   0x2   :  { %s680_s11 = smov 0   ;;  %s682_s12 = smov 0  }
   0x3 LB: > { %s697_s13 = sadd.s32 4294967295, %s658_s12   ;;  %s475_s14 = sadd.s32 4294967294, %s658_s12   ;;  %s658_s12 = sphi %s682_s12, %s851_s12   ;;  %s654_s11 = sphi %s680_s11, %s850_s11   ;;  %s650_s10 = sphi %s678_s10, %s849_s10   ;;  %s646_s9 = sphi %s676_s9, %s848_s9  }
   0x4   : > { %s701_s15 = sadd.s32 1, %s658_s12   ;;  %s69_s16 = sadd.s32 1, %s654_s11 }
   0x5   : > { %s66_s17 = ssub.s32 %s658_s12, %s701_s15  ;;  %p79_p0 = scmp.ne.s32.totalorder %s654_s11, %s650_s10 }
   0x6   : > { %p67_p1 = scmp.eq.s32.totalorder %s66_s17, 0  ;;  %p80_p2 = scmp.eq.s32.totalorder %s697_s13, 1 }
   0x7   : > { %p85_p3 = scmp.ne.s32.totalorder %s650_s10, %s646_s9  ;;  %p86_p4 = scmp.eq.s32.totalorder %s475_s14, 1 }
   0x8   : > { %s712_s18 = scalar_select %p67_p1, %s654_s11, %s69_s16  }
   0x9   : > { %p714_p5 = por %p80_p2, %p79_p0  ;;  %p718_p6 = por %p86_p4, %p85_p3 }
   0xa   : > { %p478_p7 = scmp.ge.s32.totalorder %s658_s12, 1  ;;  %p116_p8 = scmp.lt.s32.totalorder %s658_s12, 3 }
   0xc   : > { %p117_p9 = pnand %p478_p7, %p116_p8 }
   0xd   : > { %s480_s21 = sshll.u32 (!%p117_p9), %s697_s13, 5  ;;  %s135_s28 = sand.u32 (!%p117_p9), 1, %s650_s10  }
   0xe   : > { %120 = sbr.rel (%p117_p9) target bundleno = 336 (0x150), region = 28  ;;  %p139_p10 = scmp.lt.s32.totalorder (!%p117_p9), %s480_s21, 63 }
   0xf   : > { %s479_s29 = sshll.u32 (!%p117_p9), %s135_s28, 4  ;;  %s520_s30 = sshll.u32 (!%p117_p9), %s697_s13, 8 }
  0x10   : > { %s137_s3 = scalar_lea.vmem (!%p117_p9), [#allocation2], %s479_s29  ;;  %s808_s7 = scalar_lea.hbm (!%p117_p9), %s845_s2, %s520_s30 }
  0x11   : > { %s416_s4 = sshll.u32 (!%p117_p9), %s137_s3, 4  ;;  %s402_s8 = scalar_lea.sflag (!%p117_p9), [#allocation3], %s135_s28  ;;  %s417_s4 = int_to_ptr.vmem [resolvable:$true] %s416_s4 }
  0x12   : > { %s598_s14 = scalar_lea.vmem (!%p117_p9), %s417_s4, 256  ;;  %s660_s13 = smov (!%p117_p9), [#allocation2]  }
  0x13   : > { %vm178_vm0 = vcmask 523264   ;;  %v728_v0 = vld [vmem:[%s843_s0] sm:$0xff]  ;;  %s853_s21 = smov (!%p139_p10, %s480_s21), 63  ;;  %p599_p11 = scmp.ne.s32.totalorder %s417_s4, %s598_s14 }
  0x14   : > { %553 = vmatprep.mubr.msk.f32.mxu0 %vm178_vm0, %v728_v0  ;;  %s481_s24 = sshll.u32 %s853_s21, 3  ;;  %s602_s16 = sshll.u32 %s660_s13, 4  ;;  %s603_s16 = int_to_ptr.vmem [resolvable:$false] %s602_s16 }
  0x15   : > { %s735_s27 = scalar_lea.vmem %s844_s1, %s481_s24  ;;  %p600_p12 = pnand %p599_p11, %p714_p5 }
  0x16   : > { %v177_v1 = vld [vmem:[%s735_s27 + $0xf8] sm:$0xff]  ;;  %v176_v3 = vld [vmem:[%s735_s27 + $0xf0] sm:$0xff]  ;;  %v175_v5 = vld [vmem:[%s735_s27 + $0xe8] sm:$0xff]  ;;  %s604_s17 = scalar_lea.vmem %s603_s16, 512  ;;  %p605_p0 = scmp.lt.s32.totalorder %s417_s4, %s603_s16 }
  0x17   : > { %v161_v2 = vld [vmem:[%s735_s27 + $0x78] sm:$0xff]  ;;  %521 = vmatprep.subr.msk.mxu0 %vm178_vm0, %v177_v1  ;;  %v160_v4 = vld [vmem:[%s735_s27 + $0x70] sm:$0xff]  ;;  %v159_v6 = vld [vmem:[%s735_s27 + $0x68] sm:$0xff]  ;;  %p601_p13 = pneg %p600_p12  ;;  %p606_p1 = scmp.lt.s32.totalorder %s604_s17, %s598_s14 }
  0x18   : > { %522 = vmatpush3.xpose.msk.msra.mxu0 %vm178_vm0, %v161_v2  ;;  %v174_v7 = vld [vmem:[%s735_s27 + $0xe0] sm:$0xff]  ;;  %v173_v9 = vld [vmem:[%s735_s27 + $0xd8] sm:$0xff]  ;;  %v172_v11 = vld [vmem:[%s735_s27 + $0xd0] sm:$0xff] }
  0x19   : > { %523 = vmatprep.subr.msk.mxu0 %vm178_vm0, %v176_v3  ;;  %v158_v8 = vld [vmem:[%s735_s27 + $0x60] sm:$0xff]  ;;  %v157_v10 = vld [vmem:[%s735_s27 + $0x58] sm:$0xff]  ;;  %v156_v12 = vld [vmem:[%s735_s27 + $0x50] sm:$0xff]  ;;  %p607_p2 = por %p606_p1, %p605_p0 }
  0x1a   : > { %v171_v13 = vld [vmem:[%s735_s27 + $0xc8] sm:$0xff]  ;;  %v170_v15 = vld [vmem:[%s735_s27 + $0xc0] sm:$0xff]  ;;  %v169_v17 = vld [vmem:[%s735_s27 + $0xb8] sm:$0xff] }
  0x1b   : > { %v155_v14 = vld [vmem:[%s735_s27 + $0x48] sm:$0xff]  ;;  %v154_v16 = vld [vmem:[%s735_s27 + $0x40] sm:$0xff]  ;;  %v153_v18 = vld [vmem:[%s735_s27 + $0x38] sm:$0xff]  ;;  %p608_p3 = pnand %p607_p2, %p601_p13 }
  0x1c   : > { %524 = vmatpush3.xpose.msk.msra.mxu0 %vm178_vm0, %v160_v4  ;;  %v168_v19 = vld [vmem:[%s735_s27 + $0xb0] sm:$0xff]  ;;  %v167_v21 = vld [vmem:[%s735_s27 + $0xa8] sm:$0xff]  ;;  %v166_v23 = vld [vmem:[%s735_s27 + $0xa0] sm:$0xff] }
  0x1d   : > { %525 = vmatprep.subr.msk.mxu0 %vm178_vm0, %v175_v5  ;;  %v152_v20 = vld [vmem:[%s735_s27 + $0x30] sm:$0xff]  ;;  %v151_v22 = vld [vmem:[%s735_s27 + $0x28] sm:$0xff]  ;;  %v150_v24 = vld [vmem:[%s735_s27 + $0x20] sm:$0xff] }
  0x1e   : > { %v165_v25 = vld [vmem:[%s735_s27 + $0x98] sm:$0xff]  ;;  %v164_v27 = vld [vmem:[%s735_s27 + $0x90] sm:$0xff]  ;;  %v163_v29 = vld [vmem:[%s735_s27 + $0x88] sm:$0xff] }
  0x1f   : > { %v149_v26 = vld [vmem:[%s735_s27 + $0x18] sm:$0xff]  ;;  %v148_v28 = vld [vmem:[%s735_s27 + $0x10] sm:$0xff]  ;;  %v147_v30 = vld [vmem:[%s735_s27 + $0x8] sm:$0xff] }
  0x20   : > { %526 = vmatpush3.xpose.msk.msra.mxu0 %vm178_vm0, %v159_v6  ;;  %v162_v31 = vld [vmem:[%s735_s27 + $0x80] sm:$0xff] }
  0x21   : > { %527 = vmatprep.subr.msk.mxu0 %vm178_vm0, %v174_v7  ;;  %v146_v32 = vld [vmem:[%s735_s27] sm:$0xff] }
  0x24   : > { %528 = vmatpush3.xpose.msk.msra.mxu0 %vm178_vm0, %v158_v8 }
  0x25   : > { %529 = vmatprep.subr.msk.mxu0 %vm178_vm0, %v173_v9 }
  0x28   : > { %530 = vmatpush3.xpose.msk.msra.mxu0 %vm178_vm0, %v157_v10 }
  0x29   : > { %531 = vmatprep.subr.msk.mxu0 %vm178_vm0, %v172_v11 }
  0x2c   : > { %532 = vmatpush3.xpose.msk.msra.mxu0 %vm178_vm0, %v156_v12 }
  0x2d   : > { %533 = vmatprep.subr.msk.mxu0 %vm178_vm0, %v171_v13 }
  0x30   : > { %534 = vmatpush3.xpose.msk.msra.mxu0 %vm178_vm0, %v155_v14 }
  0x31   : > { %535 = vmatprep.subr.msk.mxu0 %vm178_vm0, %v170_v15 }
  0x34   : > { %536 = vmatpush3.xpose.msk.msra.mxu0 %vm178_vm0, %v154_v16 }
  0x35   : > { %537 = vmatprep.subr.msk.mxu0 %vm178_vm0, %v169_v17 }
  0x38   : > { %538 = vmatpush3.xpose.msk.msra.mxu0 %vm178_vm0, %v153_v18 }
  0x39   : > { %539 = vmatprep.subr.msk.mxu0 %vm178_vm0, %v168_v19 }
  0x3c   : > { %540 = vmatpush3.xpose.msk.msra.mxu0 %vm178_vm0, %v152_v20 }
  0x3d   : > { %541 = vmatprep.subr.msk.mxu0 %vm178_vm0, %v167_v21 }
  0x40   : > { %542 = vmatpush3.xpose.msk.msra.mxu0 %vm178_vm0, %v151_v22 }
  0x41   : > { %543 = vmatprep.subr.msk.mxu0 %vm178_vm0, %v166_v23 }
  0x44   : > { %544 = vmatpush3.xpose.msk.msra.mxu0 %vm178_vm0, %v150_v24 }
  0x45   : > { %545 = vmatprep.subr.msk.mxu0 %vm178_vm0, %v165_v25 }
  0x48   : > { %546 = vmatpush3.xpose.msk.msra.mxu0 %vm178_vm0, %v149_v26 }
  0x49   : > { %547 = vmatprep.subr.msk.mxu0 %vm178_vm0, %v164_v27 }
  0x4c   : > { %548 = vmatpush3.xpose.msk.msra.mxu0 %vm178_vm0, %v148_v28 }
  0x4d   : > { %549 = vmatprep.subr.msk.mxu0 %vm178_vm0, %v163_v29 }
  0x50   : > { %550 = vmatpush3.xpose.msk.msra.mxu0 %vm178_vm0, %v147_v30 }
  0x51   : > { %551 = vmatprep.subr.msk.mxu0 %vm178_vm0, %v162_v31 }
  0x54   : > { %552 = vmatpush3.xpose.msk.msra.mxu0 %vm178_vm0, %v146_v32 }
  0x57   : > { %554 = vmatmul.mubr.msk.f32.vlgmr.msra.gmra.mxu0 %vm178_vm0, %v728_v0 }
 0x117   : > { %v344_v33 = vpop.f32.mrf.mxu0 }
 0x118   : > { %v349_v34 = vrot.slane %v344_v33, 4  ;;  %v361_v35 = vmul.f32 %v344_v33, %v344_v33 }
 0x119   : > { %v346_v36 = vpop.f32.mrf.mxu0 }
 0x11a   : > { %v350_v37 = vadd.f32 %v349_v34, %v344_v33  ;;  %v363_v38 = vrot.slane %v361_v35, 4  ;;  %v355_v39 = vrot.slane %v346_v36, 4  ;;  %v362_v40 = vmul.f32 %v346_v36, %v346_v36 }
 0x11c   : > { %v351_v41 = vrot.slane %v350_v37, 2  ;;  %v364_v42 = vadd.f32 %v363_v38, %v361_v35  ;;  %v356_v43 = vadd.f32 %v355_v39, %v346_v36  ;;  %v369_v44 = vrot.slane %v362_v40, 4 }
 0x11e   : > { %v352_v45 = vadd.f32 %v351_v41, %v350_v37  ;;  %v365_v46 = vrot.slane %v364_v42, 2  ;;  %v357_v47 = vrot.slane %v356_v43, 2  ;;  %v370_v48 = vadd.f32 %v369_v44, %v362_v40 }
 0x120   : > { %v353_v49 = vrot.slane %v352_v45, 1  ;;  %v366_v50 = vadd.f32 %v365_v46, %v364_v42  ;;  %v358_v51 = vadd.f32 %v357_v47, %v356_v43  ;;  %v371_v52 = vrot.slane %v370_v48, 2 }
 0x122   : > { %v354_v53 = vadd.f32 %v353_v49, %v352_v45  ;;  %v367_v54 = vrot.slane %v366_v50, 1  ;;  %v359_v55 = vrot.slane %v358_v51, 1  ;;  %v372_v56 = vadd.f32 %v371_v52, %v370_v48 }
 0x124   : > { %v368_v57 = vadd.f32 %v367_v54, %v366_v50  ;;  %v375_v58 = vmul.f32 0.125, %v354_v53  ;;  %v360_v59 = vadd.f32 %v359_v55, %v358_v51  ;;  %v373_v60 = vrot.slane %v372_v56, 1 }
 0x126   : > { %v377_v61 = vmul.f32 0.125, %v368_v57  ;;  %v379_v62 = vmul.f32 %v375_v58, %v375_v58  ;;  %v374_v63 = vadd.f32 %v373_v60, %v372_v56  ;;  %v376_v0 = vmul.f32 0.125, %v360_v59 }
 0x127   : > { %v385_v9 = vsub.f32 %v344_v33, %v375_v58 }
 0x128   : > { %v381_v1 = vsub.f32 %v377_v61, %v379_v62  ;;  %v378_v2 = vmul.f32 0.125, %v374_v63  ;;  %v380_v3 = vmul.f32 %v376_v0, %v376_v0  ;;  %v386_v12 = vsub.f32 %v346_v36, %v376_v0 }
 0x12a   : > { %v383_v4 = vmax.f32 %v381_v1, 0.0  ;;  %v382_v5 = vsub.f32 %v378_v2, %v380_v3 }
 0x12c   : > { %v387_v6 = vadd.f32 0.0001, %v383_v4  ;;  %v384_v7 = vmax.f32 %v382_v5, 0.0 }
 0x12e   : > { %594 = vrsqrt.f32 %v387_v6  ;;  %v388_v8 = vadd.f32 0.0001, %v384_v7 }
 0x130   : > { %596 = vrsqrt.f32 %v388_v8 }
 0x13b   : > { %v595_v10 = vpop.eup %594 }
 0x13c   : > { %v391_v11 = vmul.f32 %v595_v10, %v385_v9 }
 0x13d   : > { %v597_v13 = vpop.eup %596 }
 0x13e   : > { %vm393_vm1 = vcmp.ge.f32.partialorder %v391_v11, 0.0  ;;  %v395_v14 = vmul.f32 0.01, %v391_v11  ;;  %v392_v15 = vmul.f32 %v597_v13, %v386_v12 }
 0x140   : > { %v397_v16 = vsel %vm393_vm1, %v391_v11, %v395_v14  ;;  %v396_v17 = vmul.f32 0.01, %v392_v15  ;;  %vm394_vm2 = vcmp.ge.f32.partialorder %v392_v15, 0.0 }
 0x141   : > { %399 = vst [vmem:[%s137_s3] sm:$0xff] %v397_v16 }
 0x142   : > { %v398_v18 = vsel %vm394_vm2, %v392_v15, %v396_v17 }
 0x143   : > { %400 = vst [vmem:[%s137_s3 + $0x8] sm:$0xff] %v398_v18 }
 0x144   : > { %611 = shalt.err (!%p608_p3)
}
 0x145   : > { %s612_s21 = scalar_lea.hbm %s808_s7, 256  ;;  %s616_s24 = scalar_lea.hbm %s845_s2, 512 }
 0x146   : > { %p613_p4 = scmp.ne.s32.totalorder %s808_s7, %s612_s21  ;;  %p617_p9 = scmp.lt.s32.totalorder %s808_s7, %s845_s2 }
 0x147   : > { %p618_p10 = scmp.lt.s32.totalorder %s616_s24, %s612_s21 }
 0x148   : > { %p614_p7 = pnand %p613_p4, %p714_p5 }
 0x149   : > { %p619_p11 = por %p618_p10, %p617_p9 }
 0x14a   : > { %p615_p8 = pneg %p614_p7 }
 0x14c   : > { %p620_p12 = pnand %p619_p11, %p615_p8 }
 0x14e   : > { %623 = shalt.err (!%p620_p12)
}
 0x14f   : > { %555 = dma.vmem_to_hbm [thread:$0]  (%p714_p5), %s417_s4, 256, %s808_s7, %s402_s8  }
 0x150 PF: > { %p561_p13 = scmp.ge.s32.totalorder %s658_s12, 2  ;;  %s428_s27 = sand.u32 1, %s646_s9  }
 0x151   : > { %s429_s28 = scalar_lea.sflag [#allocation3], %s428_s27 }
 0x152   : > { %p558_p0 = pnand %p561_p13, %p718_p6 }
 0x154   : > { %p559_p1 = pneg %p558_p0 }
 0x156   : > { %641 = dma.done.wait (%p559_p1), %s429_s28, 256  }
 0x157   : > { %643 = vsyncadd (%p559_p1), %s429_s28, 4294967040  ;;  %p12_p2 = scmp.ge.s32.totalorder %s701_s15, 4   ;;  %s848_s9 = smov %s650_s10 }
 0x158   : > { %s849_s10 = smov %s654_s11  ;;  %s850_s11 = smov %s712_s18 }
 0x159   : > { %s851_s12 = smov %s701_s15  ;;  %14 = sbr.rel (!%p12_p2) target bundleno = 3 (0x3), region = 63 }
 0x15e   :  { %434 = vsyncpa [#allocation3], 1 }
 0x15f   :  { %436 = vsyncpa [#allocation3 + $0x1], 1 }

</bundles_post_ra>
